<compile_context>
chip_gen: v5e
topology: v5e:2x2
jax: 0.10.0
libtpu: 0.0.40
codegen_flags: <defaults>
</compile_context>

<pallas_src>
import jax
import jax.numpy as jnp
from jax.experimental import pallas as pl
from jax.experimental.pallas import tpu as pltpu


def _round_up(x, m):
    return ((x + m - 1) // m) * m


def _tpu_generation():
    try:
        kind = jax.devices()[0].device_kind.lower()
    except Exception:
        return "unknown"
    if "v5 lite" in kind or "v5lite" in kind or "v5e" in kind:
        return "v5e"
    if "v6" in kind:
        return "v6e"
    if "v7" in kind:
        return "v7x"
    return "unknown"


# (tm, tn, tk) defaults per generation (bf16 MXU, f32 accumulator).
_TILE_DEFAULTS = {
    "v5e": (512, 512, 1024),
    "v6e": (1024, 1024, 1024),
    "v7x": (768, 768, 1024),
    "unknown": (512, 512, 1024),
}

# Conservative scoped-VMEM ceilings (physical: 128 MiB v5e/v6e, 64 MiB v7x).
_VMEM_CEILING = {
    "v5e": 100 << 20,
    "v6e": 100 << 20,
    "v7x": 52 << 20,
}


def _vmem_ceiling(gen):
    if gen in _VMEM_CEILING:
        return _VMEM_CEILING[gen]
    try:
        return int(pltpu.get_tpu_info().vmem_capacity_bytes * 3 // 4)
    except Exception:
        return 48 << 20


def _sublane(dtype):
    # Sublane packing multiple: 8 for 32-bit, 16 for bf16, 32 for 8-bit.
    return {4: 8, 2: 16, 1: 32}.get(jnp.dtype(dtype).itemsize, 8)


def _block_spec(shape, index_map, buffer_count=None):
    if buffer_count is not None:
        try:
            return pl.BlockSpec(shape, index_map,
                                pipeline_mode=pl.Buffered(buffer_count))
        except Exception:
            pass  # older jax without pipeline_mode / Buffered — default depth
    return pl.BlockSpec(shape, index_map)


# --------------------------------------------------------------------------
# Kernels
# --------------------------------------------------------------------------
def _linear_kernel_bias(x_ref, wt_ref, b_ref, o_ref, acc_ref):
    # x_ref: (tm, tk) compute dtype, wt_ref: (tk, tn), b_ref: (1, tn)
    # o_ref: (tm, tn) output dtype,  acc_ref: (tm, tn) f32 resident over K.
    @pl.when(pl.program_id(2) == 0)
    def _init():
        # Fold bias into the accumulator init (drops the epilogue add).
        acc_ref[...] = jnp.broadcast_to(
            b_ref[...].astype(jnp.float32), acc_ref.shape)

    acc_ref[...] += jnp.dot(
        x_ref[...], wt_ref[...], preferred_element_type=jnp.float32)

    @pl.when(pl.program_id(2) == pl.num_programs(2) - 1)
    def _finalize():
        o_ref[...] = acc_ref[...].astype(o_ref.dtype)


def _linear_kernel_nobias(x_ref, wt_ref, o_ref, acc_ref):
    @pl.when(pl.program_id(2) == 0)
    def _init():
        acc_ref[...] = jnp.zeros_like(acc_ref)

    acc_ref[...] += jnp.dot(
        x_ref[...], wt_ref[...], preferred_element_type=jnp.float32)

    @pl.when(pl.program_id(2) == pl.num_programs(2) - 1)
    def _finalize():
        o_ref[...] = acc_ref[...].astype(o_ref.dtype)


# --------------------------------------------------------------------------
# One-time weight/bias preparation (the RoCoFT weight is frozen at init).
# --------------------------------------------------------------------------
def prepare_rocoft_random(weight, bias=None, *, compute_dtype=jnp.bfloat16,
                          tn=None, tk=None):
    """Transpose W to [K, N], cast to MXU dtype and K-pad — done ONCE."""
    N, K = weight.shape
    gen = _tpu_generation()
    tm_d, tn_d, tk_d = _TILE_DEFAULTS.get(gen, _TILE_DEFAULTS["unknown"])
    if tn is None:
        tn = tn_d
    if tk is None:
        tk = tk_d
    tn = min(tn, _round_up(N, 128))
    if K <= tk:
        tk = K                       # single K step, block dim == full dim
        Kp = K
    else:
        Kp = _round_up(K, tk)

    wt = weight.T.astype(compute_dtype)            # [K, N], lane-dense RHS
    if Kp != K:
        wt = jnp.pad(wt, ((0, Kp - K), (0, 0)))    # zero pad: reduction-safe
    b2d = None if bias is None else bias.reshape(1, N)

    return dict(wt=wt, b2d=b2d, K=K, N=N, Kp=Kp, tk=tk, tn=tn,
                tm_default=tm_d, gen=gen, compute_dtype=compute_dtype)


# --------------------------------------------------------------------------
# Per-call forward: out = x @ W.T + b
# --------------------------------------------------------------------------
def rocoft_random_linear(x, params, *, tm=None):
    """Forward of the RoCoFT `random` wrapper: F.linear(x, weight, bias)."""
    K, N, Kp = params["K"], params["N"], params["Kp"]
    tk, tn, gen = params["tk"], params["tn"], params["gen"]
    cdt = params["compute_dtype"]
    wt, b2d = params["wt"], params["b2d"]

    *lead, Kx = x.shape
    assert Kx == K, f"expected last dim {K}, got {Kx}"
    x2d = x.reshape(-1, K)
    M = x2d.shape[0]
    out_dtype = x.dtype

    sub = _sublane(cdt)
    if tm is None:
        tm = params["tm_default"]
    tm = min(tm, _round_up(M, sub))

    # v7x megacore: keep at least one parallel grid axis with >= 2 blocks so
    # the two TensorCores both get work; split M (never N) if needed.
    if (gen == "v7x" and -(-M // tm) == 1 and -(-N // tn) == 1
            and M >= 2 * sub):
        tm = _round_up((M + 1) // 2, sub)

    # Only K needs padding (zeros feed the reduction); trailing partial M/N
    # blocks produce garbage the exact (M, N) out_shape discards.
    if Kp != K:
        x2d = jnp.pad(x2d, ((0, 0), (0, Kp - K)))
    if x2d.dtype != cdt:
        x2d = x2d.astype(cdt)

    grid = (pl.cdiv(M, tm), pl.cdiv(N, tn), Kp // tk)

    # Deeper pipelining on v5e (lowest HBM bandwidth of the three).
    bufs = 3 if gen == "v5e" else None
    n_bufs = 3 if gen == "v5e" else 2

    cdt_size = jnp.dtype(cdt).itemsize
    out_size = jnp.dtype(out_dtype).itemsize
    vmem_req = (
        n_bufs * tm * tk * cdt_size          # x tiles
        + n_bufs * tk * tn * cdt_size        # W tiles
        + 2 * tm * tn * out_size             # output tiles
        + tm * tn * 4                        # f32 accumulator
        + (2 * tn * jnp.dtype(b2d.dtype).itemsize if b2d is not None else 0)
    )
    ceiling = _vmem_ceiling(gen)
    vmem_limit = min(max(int(vmem_req * 1.25), 16 << 20), ceiling)
    vmem_limit = max(vmem_limit, int(vmem_req * 1.1))  # never below need

    in_specs = [
        _block_spec((tm, tk), lambda i, j, k: (i, k), bufs),
        _block_spec((tk, tn), lambda i, j, k: (k, j), bufs),
    ]
    operands = [x2d, wt]
    if b2d is not None:
        in_specs.append(pl.BlockSpec((1, tn), lambda i, j, k: (0, j)))
        operands.append(b2d)
        kernel = _linear_kernel_bias
    else:
        kernel = _linear_kernel_nobias

    out2d = pl.pallas_call(
        kernel,
        out_shape=jax.ShapeDtypeStruct((M, N), out_dtype),
        grid_spec=pltpu.PrefetchScalarGridSpec(
            num_scalar_prefetch=0,
            grid=grid,
            in_specs=in_specs,
            out_specs=pl.BlockSpec((tm, tn), lambda i, j, k: (i, j)),
            scratch_shapes=[pltpu.VMEM((tm, tn), jnp.float32)],
        ),
        compiler_params=pltpu.CompilerParams(
            dimension_semantics=("parallel", "parallel", "arbitrary"),
            vmem_limit_bytes=int(vmem_limit),
        ),
    )(*operands)

    return out2d.reshape(*lead, N)


if __name__ == "__main__":
    key = jax.random.PRNGKey(0)
    k_x, k_w, k_b, k_mask, k_x2, k_w2, k_b2 = jax.random.split(key, 7)

    # --- Case 1: small shapes matching the module's typical use ------------
    batch, seq, in_features, out_features = 2, 8, 32, 64
    rank = 0.1

    x = jax.random.normal(k_x, (batch, seq, in_features), dtype=jnp.float32)
    weight = jax.random.normal(
        k_w, (out_features, in_features), dtype=jnp.float32) * 0.05
    bias = jax.random.normal(k_b, (out_features,), dtype=jnp.float32) * 0.05
    random_mask = (
        jax.random.uniform(k_mask, (out_features, in_features)) <= rank)
    # TODO(synk): random_mask only gates gradients via a backward hook; it has
    # no forward-pass Pallas equivalent, so it is intentionally unused here.

    params = prepare_rocoft_random(weight, bias)   # one-time (module init)
    out = rocoft_random_linear(x, params)
    jax.block_until_ready(out)
    assert out.shape == (batch, seq, out_features)

    cdt = params["compute_dtype"]
    # Tight check: reference with the same bf16 MXU operands, f32 accumulate.
    ref_bf16 = (x.astype(cdt).astype(jnp.float32)
                @ weight.T.astype(cdt).astype(jnp.float32) + bias)
    assert jnp.allclose(out, ref_bf16, atol=1e-3, rtol=1e-3)
    # Loose check: exact f32 F.linear semantics (bf16 MXU rounding tolerance).
    ref_f32 = x @ weight.T + bias
    assert jnp.allclose(out, ref_f32, atol=5e-2, rtol=5e-2)

    # --- Case 2: forced small tiles so multi-block M/N/K paths (partial
    #     trailing blocks, K accumulation, bias-folded init) are exercised ---
    b2, s2, k2d, n2d = 3, 7, 384, 272
    x2 = jax.random.normal(k_x2, (b2, s2, k2d), dtype=jnp.float32)
    w2 = jax.random.normal(k_w2, (n2d, k2d), dtype=jnp.float32) * 0.05
    bz2 = jax.random.normal(k_b2, (n2d,), dtype=jnp.float32) * 0.05
    params2 = prepare_rocoft_random(w2, bz2, tn=128, tk=128)
    out2 = rocoft_random_linear(x2, params2, tm=16)
    jax.block_until_ready(out2)
    assert out2.shape == (b2, s2, n2d)
    ref2 = (x2.astype(cdt).astype(jnp.float32)
            @ w2.T.astype(cdt).astype(jnp.float32) + bz2)
    assert jnp.allclose(out2, ref2, atol=1e-3, rtol=1e-3)

    print("KERNEL_OK")
</pallas_src>

<mosaic_0001>
module attributes {stable_mosaic.version = 11 : i64} {
  func.func @_linear_kernel_bias(%arg0: i32, %arg1: i32, %arg2: i32, %arg3: memref<16x32xbf16, #tpu.memory_space<vmem>>, %arg4: memref<32x128xbf16, #tpu.memory_space<vmem>>, %arg5: memref<1x128xf32, #tpu.memory_space<vmem>>, %arg6: memref<16x128xf32, #tpu.memory_space<vmem>>, %arg7: memref<16x128xf32, #tpu.memory_space<vmem>>) attributes {dimension_semantics = [#tpu.dimension_semantics<parallel>, #tpu.dimension_semantics<parallel>, #tpu.dimension_semantics<arbitrary>], iteration_bounds = array<i64: 1, 1, 1>, scalar_prefetch = 0 : i64, scratch_operands = 1 : i64, tpu.core_type = #tpu.core_type<tc>, window_params = [{transform_indices = @transform_0, window_bounds = array<i64: 16, 32>}, {transform_indices = @transform_1, window_bounds = array<i64: 32, 128>}, {transform_indices = @transform_2, window_bounds = array<i64: 1, 128>}, {transform_indices = @transform_3, window_bounds = array<i64: 16, 128>}]} {
    %c0_i32 = arith.constant 0 : i32
    %0 = arith.cmpi eq, %arg2, %c0_i32 : i32
    %1 = arith.extui %0 : i1 to i32
    %c0_i32_0 = arith.constant 0 : i32
    %2 = arith.cmpi ne, %1, %c0_i32_0 : i32
    scf.if %2 {
      %c0_10 = arith.constant 0 : index
      %c0_11 = arith.constant 0 : index
      %12 = vector.load %arg5[%c0_10, %c0_11] : memref<1x128xf32, #tpu.memory_space<vmem>>, vector<1x128xf32>
      %13 = vector.shape_cast %12 : vector<1x128xf32> to vector<1x128xf32>
      %14 = vector.broadcast %13 : vector<1x128xf32> to vector<16x128xf32>
      %c0_12 = arith.constant 0 : index
      %c0_13 = arith.constant 0 : index
      %15 = vector.load %arg7[%c0_12, %c0_13] : memref<16x128xf32, #tpu.memory_space<vmem>>, vector<16x128xf32>
      tpu.vector_store %arg7[%c0_12, %c0_13], %14 {strides = array<i32>} : memref<16x128xf32, #tpu.memory_space<vmem>>, vector<16x128xf32>,
    } else {
    }
    %c0 = arith.constant 0 : index
    %c0_1 = arith.constant 0 : index
    %3 = vector.load %arg7[%c0, %c0_1] : memref<16x128xf32, #tpu.memory_space<vmem>>, vector<16x128xf32>
    %c0_2 = arith.constant 0 : index
    %c0_3 = arith.constant 0 : index
    %4 = vector.load %arg3[%c0_2, %c0_3] : memref<16x32xbf16, #tpu.memory_space<vmem>>, vector<16x32xbf16>
    %c0_4 = arith.constant 0 : index
    %c0_5 = arith.constant 0 : index
    %5 = vector.load %arg4[%c0_4, %c0_5] : memref<32x128xbf16, #tpu.memory_space<vmem>>, vector<32x128xbf16>
    %cst = arith.constant dense<0.000000e+00> : vector<16x128xf32>
    %6 = tpu.matmul %4, %5, %cst {dimension_numbers = #tpu.dot_dimension_numbers<[1], [0], [0], [1], [0, 0, 1, 1], [], []>} : vector<16x32xbf16>, vector<32x128xbf16>, vector<16x128xf32> -> vector<16x128xf32>
    %7 = arith.addf %3, %6 : vector<16x128xf32>
    %c0_6 = arith.constant 0 : index
    %c0_7 = arith.constant 0 : index
    %8 = vector.load %arg7[%c0_6, %c0_7] : memref<16x128xf32, #tpu.memory_space<vmem>>, vector<16x128xf32>
    tpu.vector_store %arg7[%c0_6, %c0_7], %7 {strides = array<i32>} : memref<16x128xf32, #tpu.memory_space<vmem>>, vector<16x128xf32>,
    %c0_i32_8 = arith.constant 0 : i32
    %9 = arith.cmpi eq, %arg2, %c0_i32_8 : i32
    %10 = arith.extui %9 : i1 to i32
    %c0_i32_9 = arith.constant 0 : i32
    %11 = arith.cmpi ne, %10, %c0_i32_9 : i32
    scf.if %11 {
      %c0_10 = arith.constant 0 : index
      %c0_11 = arith.constant 0 : index
      %12 = vector.load %arg7[%c0_10, %c0_11] : memref<16x128xf32, #tpu.memory_space<vmem>>, vector<16x128xf32>
      %c0_12 = arith.constant 0 : index
      %c0_13 = arith.constant 0 : index
      %13 = vector.load %arg6[%c0_12, %c0_13] : memref<16x128xf32, #tpu.memory_space<vmem>>, vector<16x128xf32>
      tpu.vector_store %arg6[%c0_12, %c0_13], %12 {strides = array<i32>} : memref<16x128xf32, #tpu.memory_space<vmem>>, vector<16x128xf32>,
    } else {
    }
    return
  }
  func.func @transform_0(%arg0: i32, %arg1: i32, %arg2: i32) -> (i32, i32) {
    %c0_i32 = arith.constant 0 : i32
    return %arg0, %arg2 : i32, i32
  }
  func.func @transform_1(%arg0: i32, %arg1: i32, %arg2: i32) -> (i32, i32) {
    %c0_i32 = arith.constant 0 : i32
    return %arg2, %arg1 : i32, i32
  }
  func.func @transform_2(%arg0: i32, %arg1: i32, %arg2: i32) -> (i32, i32) {
    %c0_i32 = arith.constant 0 : i32
    %c0_i32_0 = arith.constant 0 : i32
    return %c0_i32, %arg1 : i32, i32
  }
  func.func @transform_3(%arg0: i32, %arg1: i32, %arg2: i32) -> (i32, i32) {
    %c0_i32 = arith.constant 0 : i32
    return %arg0, %arg1 : i32, i32
  }
}

</mosaic_0001>

<bundles_post_ra>
// kernel: tpu_custom_call.1
= control target key start
LH: loop header
LB: loop body
LE: loop exit
PB: predicated region body
PF: predicated region fallthrough
CT: control target
= control target key end

     0   :  { %8 = vsyncpa [#allocation4], 0  ;;  %s273_s0 = inlined_call_operand.hbm [shape: bf16[16,32], index: 0, kind: input, shape index: {}]   ;;  %s274_s1 = inlined_call_operand.hbm [shape: bf16[32,64], index: 1, kind: input, shape index: {}]   ;;  %s275_s2 = inlined_call_operand.vmem [shape: f32[1,64], index: 2, kind: input, shape index: {}]   ;;  %s276_s3 = inlined_call_operand.hbm [shape: f32[16,64], index: 3, kind: output, shape index: {}]  }
   0x1   :  { %9 = vsyncpa [#allocation7], 0 }
   0x2   :  { %10 = vsyncpa [#allocation5], 0  ;;  %s15_s14 = sshll.u32 %s273_s0, 4  ;;  %s234_s15 = smov [#allocation3]   ;;  %s16_s14 = int_to_ptr.hbm [resolvable:$true] %s15_s14 }
   0x3   :  { %s17_s16 = sshll.u32 %s234_s15, 4  ;;  %s28_s19 = sshll.u32 %s274_s1, 4  ;;  %s18_s16 = int_to_ptr.vmem [resolvable:$true] %s17_s16  ;;  %s29_s19 = int_to_ptr.hbm [resolvable:$true] %s28_s19 }
   0x4   :  { %s235_s20 = smov 64   ;;  %s236_s21 = smov 4  }
   0x5   :  { %23 = dma.hbm_to_vmem [thread:$0]  %s16_s14, 128, %s18_s16, [#allocation4], %s235_s20, %s235_s20, %s236_s21  }
   0x6   :  { %s237_s22 = smov [#allocation6]  }
   0x7   :  { %s30_s23 = sshll.u32 %s237_s22, 4  ;;  %s31_s23 = int_to_ptr.vmem [resolvable:$true] %s30_s23 }
   0x8   :  { %36 = dma.hbm_to_vmem [thread:$0]  %s29_s19, 256, %s31_s23, [#allocation7], %s235_s20, %s235_s20, %s236_s21  }
   0x9   :  { %228 = dma.done.wait [#allocation4], 128  }
   0xa   :  { %229 = vsyncadd [#allocation4], 4294967168 }
   0xb   :  { %230 = dma.done.wait [#allocation7], 256  }
   0xc   :  { %231 = vsyncadd [#allocation7], 4294967040  ;;  %v147_v0 = vld [vmem:[#allocation6 + $0x8] sm:$0xff]  ;;  %v146_v1 = vld [vmem:[#allocation6] sm:$0xff]  ;;  %vm83_vm0 = vcmask 261120   ;;  %s238_s24 = smov [#allocation8]  }
   0xd   :  { %93 = vmatpush.bf16.msra.mxu0 %v147_v0  ;;  %v145_v2 = vld [vmem:[#allocation3] sm:$0xff]  ;;  %s116_s25 = sshll.u32 %s238_s24, 4  ;;  %s118_s28 = sshll.u32 %s276_s3, 4  ;;  %s117_s25 = int_to_ptr.vmem [resolvable:$true] %s116_s25  ;;  %s119_s28 = int_to_ptr.hbm [resolvable:$true] %s118_s28 }
   0xe   :  { %v155_v3 = vld [vmem:[%s275_s2] ss:$0 sm:$0xff]  ;;  %s239_s29 = smov 128   ;;  %s240_s30 = smov 8  }
  0x11   :  { %94 = vmatpush.bf16.msra.mxu0 %v146_v1 }
  0x14   :  { %144 = vmatmul.msk.bf16.vlgmr.msra.gmra.mxu0 %vm83_vm0, %v145_v2 }
  0x91   :  { %v96_v4 = vpop.f32.mrf.mxu0 }
  0x92   :  { %v101_v5 = vadd.f32 %v155_v3, %v96_v4 }
  0x94   :  { %110 = vst [vmem:[#allocation8] sm:$0xff] %v101_v5 }
  0x99   :  { %v98_v6 = vpop.f32.mrf.mxu0 }
  0x9a   :  { %v102_v7 = vadd.f32 %v155_v3, %v98_v6 }
  0x9c   :  { %111 = vst [vmem:[#allocation8 + $0x8] sm:$0xff] %v102_v7 }
  0x9d   :  { %124 = dma.vmem_to_hbm [thread:$0]  %s117_s25, 256, %s119_s28, [#allocation5], %s239_s29, %s239_s29, %s240_s30  }
  0x9e   :  { %232 = dma.done.wait [#allocation5], 256  }
  0x9f   :  { %233 = vsyncadd [#allocation5], 4294967040 }
  0xa0   :  { %129 = vsyncpa [#allocation4], 1 }
  0xa1   :  { %130 = vsyncpa [#allocation7], 1 }
  0xa2   :  { %131 = vsyncpa [#allocation5], 1 }

</bundles_post_ra>
